<compile_context>
chip_gen: v5e
topology: v5e:2x2
jax: 0.10.0
libtpu: 0.0.40
codegen_flags: <defaults>
</compile_context>

<pallas_src>
import jax
import jax.numpy as jnp
from jax.experimental import pallas as pl
from jax.experimental.pallas import tpu as pltpu


def single_layer_kernel(x_ref, w_ref, o_ref, acc_ref):
    # x_ref: (B, tk)   w_ref: (tn, tk)   o_ref: (B, tn)   acc_ref: (B, tn) f32
    k = pl.program_id(1)

    @pl.when(k == 0)
    def _init():
        acc_ref[...] = jnp.zeros_like(acc_ref)

    # y += x @ w^T, contracting directly on K (dim 1 of both operands).
    # Keep operands in native dtype; f32 accumulation via preferred_element_type.
    acc_ref[...] += jax.lax.dot_general(
        x_ref[...],
        w_ref[...],
        dimension_numbers=(((1,), (1,)), ((), ())),
        preferred_element_type=jnp.float32,
    )

    @pl.when(k == pl.num_programs(1) - 1)
    def _finalize():
        # Softmax over dim=0 (the batch axis), in f32, per output column.
        y = acc_ref[...]
        m = jnp.max(y, axis=0, keepdims=True)
        e = jnp.exp(y - m)
        denom = jnp.sum(e, axis=0, keepdims=True)
        o_ref[...] = (e * pl.reciprocal(denom, approx=True)).astype(o_ref.dtype)


def _round_up(a: int, b: int) -> int:
    return (a + b - 1) // b * b


def single_layer_forward(x, w, *, max_tn: int = 512, max_tk: int = 512):
    """y = softmax(x @ w^T, axis=0).  x: (B, K), w: (N, K)."""
    B, K = x.shape
    N, Kw = w.shape
    assert K == Kw, "weight inner dim must match input features"

    # Lane-friendly padding of K and N (never B: softmax reduction is over dim 0).
    K_pad = max(_round_up(K, 128), 128)
    N_pad = max(_round_up(N, 128), 128)
    tk = min(K_pad, max_tk)
    tn = min(N_pad, max_tn)

    x_p = jnp.pad(x, ((0, 0), (0, K_pad - K))) if K_pad != K else x
    w_p = (
        jnp.pad(w, ((0, N_pad - N), (0, K_pad - K)))
        if (N_pad != N or K_pad != K)
        else w
    )

    grid = (N_pad // tn, K_pad // tk)  # N parallel, K (reduction) last.

    out_p = pl.pallas_call(
        single_layer_kernel,
        out_shape=jax.ShapeDtypeStruct((B, N_pad), x.dtype),
        grid_spec=pltpu.PrefetchScalarGridSpec(
            num_scalar_prefetch=0,
            grid=grid,
            in_specs=[
                pl.BlockSpec((B, tk), lambda j, k: (0, k),
                             memory_space=pltpu.VMEM),
                pl.BlockSpec((tn, tk), lambda j, k: (j, k),
                             memory_space=pltpu.VMEM),
            ],
            out_specs=pl.BlockSpec((B, tn), lambda j, k: (0, j),
                                   memory_space=pltpu.VMEM),
            scratch_shapes=[pltpu.VMEM((B, tn), jnp.float32)],
        ),
        compiler_params=pltpu.CompilerParams(
            dimension_semantics=("parallel", "arbitrary"),
        ),
    )(x_p, w_p)

    return out_p[:, :N] if N_pad != N else out_p


if __name__ == "__main__":
    key = jax.random.PRNGKey(0)
    k_w, k_x = jax.random.split(key)

    num_inputs, num_outputs = 3, 3
    batch = 8

    # nn.init.normal_(weight, mean=0, std=2.5), shape (num_outputs, num_inputs)
    w = jax.random.normal(k_w, (num_outputs, num_inputs), dtype=jnp.float32) * 2.5
    x = jax.random.normal(k_x, (batch, num_inputs), dtype=jnp.float32)

    out = single_layer_forward(x, w)
    jax.block_until_ready(out)

    # Sanity check against plain-JAX reference (tolerance accounts for the
    # approximate EUP reciprocal used in the softmax normalization).
    y_ref = x @ w.T
    ref = jax.nn.softmax(y_ref, axis=0)
    assert out.shape == ref.shape
    assert jnp.allclose(out, ref, atol=2e-3, rtol=2e-3), "mismatch vs reference"

    print("KERNEL_OK")
</pallas_src>

<mosaic_0001>
module attributes {stable_mosaic.version = 11 : i64} {
  func.func @single_layer_kernel(%arg0: i32, %arg1: i32, %arg2: memref<8x128xf32, #tpu.memory_space<vmem>>, %arg3: memref<128x128xf32, #tpu.memory_space<vmem>>, %arg4: memref<8x128xf32, #tpu.memory_space<vmem>>, %arg5: memref<8x128xf32, #tpu.memory_space<vmem>>) attributes {dimension_semantics = [#tpu.dimension_semantics<parallel>, #tpu.dimension_semantics<arbitrary>], iteration_bounds = array<i64: 1, 1>, scalar_prefetch = 0 : i64, scratch_operands = 1 : i64, tpu.core_type = #tpu.core_type<tc>, window_params = [{transform_indices = @transform_0, window_bounds = array<i64: 8, 128>}, {transform_indices = @transform_1, window_bounds = array<i64: 128, 128>}, {transform_indices = @transform_2, window_bounds = array<i64: 8, 128>}]} {
    %c0_i32 = arith.constant 0 : i32
    %0 = arith.cmpi eq, %arg1, %c0_i32 : i32
    %1 = arith.extui %0 : i1 to i32
    %c0_i32_0 = arith.constant 0 : i32
    %2 = arith.cmpi ne, %1, %c0_i32_0 : i32
    scf.if %2 {
      %cst_10 = arith.constant 0.000000e+00 : f32
      %12 = vector.broadcast %cst_10 : f32 to vector<8x128xf32>
      %c0_11 = arith.constant 0 : index
      %c0_12 = arith.constant 0 : index
      %13 = vector.load %arg5[%c0_11, %c0_12] : memref<8x128xf32, #tpu.memory_space<vmem>>, vector<8x128xf32>
      tpu.vector_store %arg5[%c0_11, %c0_12], %12 {strides = array<i32>} : memref<8x128xf32, #tpu.memory_space<vmem>>, vector<8x128xf32>,
    } else {
    }
    %c0 = arith.constant 0 : index
    %c0_1 = arith.constant 0 : index
    %3 = vector.load %arg5[%c0, %c0_1] : memref<8x128xf32, #tpu.memory_space<vmem>>, vector<8x128xf32>
    %c0_2 = arith.constant 0 : index
    %c0_3 = arith.constant 0 : index
    %4 = vector.load %arg2[%c0_2, %c0_3] : memref<8x128xf32, #tpu.memory_space<vmem>>, vector<8x128xf32>
    %c0_4 = arith.constant 0 : index
    %c0_5 = arith.constant 0 : index
    %5 = vector.load %arg3[%c0_4, %c0_5] : memref<128x128xf32, #tpu.memory_space<vmem>>, vector<128x128xf32>
    %cst = arith.constant dense<0.000000e+00> : vector<8x128xf32>
    %6 = tpu.matmul %4, %5, %cst {dimension_numbers = #tpu.dot_dimension_numbers<[1], [1], [0], [0], [0, 0, 1, 0], [], []>} : vector<8x128xf32>, vector<128x128xf32>, vector<8x128xf32> -> vector<8x128xf32>
    %7 = arith.addf %3, %6 : vector<8x128xf32>
    %c0_6 = arith.constant 0 : index
    %c0_7 = arith.constant 0 : index
    %8 = vector.load %arg5[%c0_6, %c0_7] : memref<8x128xf32, #tpu.memory_space<vmem>>, vector<8x128xf32>
    tpu.vector_store %arg5[%c0_6, %c0_7], %7 {strides = array<i32>} : memref<8x128xf32, #tpu.memory_space<vmem>>, vector<8x128xf32>,
    %c0_i32_8 = arith.constant 0 : i32
    %9 = arith.cmpi eq, %arg1, %c0_i32_8 : i32
    %10 = arith.extui %9 : i1 to i32
    %c0_i32_9 = arith.constant 0 : i32
    %11 = arith.cmpi ne, %10, %c0_i32_9 : i32
    scf.if %11 {
      %c0_10 = arith.constant 0 : index
      %c0_11 = arith.constant 0 : index
      %12 = vector.load %arg5[%c0_10, %c0_11] : memref<8x128xf32, #tpu.memory_space<vmem>>, vector<8x128xf32>
      %cst_12 = arith.constant dense<0xFF800000> : vector<128xf32>
      %13 = vector.multi_reduction <maximumf>, %12, %cst_12 [0] : vector<8x128xf32> to vector<128xf32>
      %14 = vector.shape_cast %13 : vector<128xf32> to vector<1x128xf32>
      %15 = vector.broadcast %14 : vector<1x128xf32> to vector<8x128xf32>
      %16 = arith.subf %12, %15 : vector<8x128xf32>
      %17 = math.exp %16 : vector<8x128xf32>
      %cst_13 = arith.constant dense<0.000000e+00> : vector<128xf32>
      %18 = vector.multi_reduction <add>, %17, %cst_13 [0] : vector<8x128xf32> to vector<128xf32>
      %19 = vector.shape_cast %18 : vector<128xf32> to vector<1x128xf32>
      %20 = tpu.reciprocal %19 {approx = true} : vector<1x128xf32> -> vector<1x128xf32>
      %21 = vector.broadcast %20 : vector<1x128xf32> to vector<8x128xf32>
      %22 = arith.mulf %17, %21 : vector<8x128xf32>
      %c0_14 = arith.constant 0 : index
      %c0_15 = arith.constant 0 : index
      %23 = vector.load %arg4[%c0_14, %c0_15] : memref<8x128xf32, #tpu.memory_space<vmem>>, vector<8x128xf32>
      tpu.vector_store %arg4[%c0_14, %c0_15], %22 {strides = array<i32>} : memref<8x128xf32, #tpu.memory_space<vmem>>, vector<8x128xf32>,
    } else {
    }
    return
  }
  func.func @transform_0(%arg0: i32, %arg1: i32) -> (i32, i32) {
    %c0_i32 = arith.constant 0 : i32
    %c0_i32_0 = arith.constant 0 : i32
    return %c0_i32, %arg1 : i32, i32
  }
  func.func @transform_1(%arg0: i32, %arg1: i32) -> (i32, i32) {
    %c0_i32 = arith.constant 0 : i32
    return %arg0, %arg1 : i32, i32
  }
  func.func @transform_2(%arg0: i32, %arg1: i32) -> (i32, i32) {
    %c0_i32 = arith.constant 0 : i32
    %c0_i32_0 = arith.constant 0 : i32
    return %c0_i32, %arg0 : i32, i32
  }
}

</mosaic_0001>

<bundles_post_ra>
// kernel: tpu_custom_call.1
= control target key start
LH: loop header
LB: loop body
LE: loop exit
PB: predicated region body
PF: predicated region fallthrough
CT: control target
= control target key end

     0   :  { %7 = vsyncpa [#allocation4], 0  ;;  %s243_s0 = inlined_call_operand.hbm [shape: f32[8,128], index: 0, kind: input, shape index: {}]   ;;  %s244_s1 = inlined_call_operand.hbm [shape: f32[128,128], index: 1, kind: input, shape index: {}]   ;;  %s245_s2 = inlined_call_operand.hbm [shape: f32[8,128], index: 2, kind: output, shape index: {}]  }
   0x1   :  { %8 = vsyncpa [#allocation7], 0 }
   0x2   :  { %9 = vsyncpa [#allocation5], 0  ;;  %s15_s11 = sshll.u32 %s243_s0, 4  ;;  %s214_s12 = smov [#allocation3]   ;;  %s16_s11 = int_to_ptr.hbm [resolvable:$true] %s15_s11 }
   0x3   :  { %s17_s13 = sshll.u32 %s214_s12, 4  ;;  %s25_s16 = sshll.u32 %s244_s1, 4  ;;  %s18_s13 = int_to_ptr.vmem [resolvable:$true] %s17_s13  ;;  %s26_s16 = int_to_ptr.hbm [resolvable:$true] %s25_s16 }
   0x4   :  { %20 = dma.hbm_to_vmem [thread:$0]  %s16_s11, 128, %s18_s13, [#allocation4]  }
   0x5   :  { %s215_s17 = smov [#allocation6]   ;;  %s216_s19 = smov 128  }
   0x6   :  { %s27_s18 = sshll.u32 %s215_s17, 4  ;;  %s217_s20 = smov 8   ;;  %s28_s18 = int_to_ptr.vmem [resolvable:$true] %s27_s18 }
   0x7   :  { %33 = dma.hbm_to_vmem [thread:$0]  %s26_s16, 2048, %s28_s18, [#allocation7], %s216_s19, %s216_s19, %s217_s20  }
   0x8   :  { %208 = dma.done.wait [#allocation4], 128  }
   0x9   :  { %209 = vsyncadd [#allocation4], 4294967168 }
   0xa   :  { %210 = dma.done.wait [#allocation7], 2048  }
   0xb   :  { %211 = vsyncadd [#allocation7], 4294965248  ;;  %v64_v0 = vld [vmem:[#allocation6 + $0x78] sm:$0xff]  ;;  %v63_v1 = vld [vmem:[#allocation6 + $0x70] sm:$0xff]  ;;  %s218_s0 = smov [#allocation8]   ;;  %s116_s23 = sshll.u32 %s245_s2, 4  ;;  %s117_s23 = int_to_ptr.hbm [resolvable:$true] %s116_s23 }
   0xc   :  { %65 = vmatpush.xpose.msra.mxu0 %v64_v0  ;;  %v62_v2 = vld [vmem:[#allocation6 + $0x68] sm:$0xff]  ;;  %v61_v3 = vld [vmem:[#allocation6 + $0x60] sm:$0xff]  ;;  %v60_v4 = vld [vmem:[#allocation6 + $0x58] sm:$0xff]  ;;  %s114_s1 = sshll.u32 %s218_s0, 4  ;;  %s115_s1 = int_to_ptr.vmem [resolvable:$true] %s114_s1 }
   0xd   :  { %v59_v5 = vld [vmem:[#allocation6 + $0x50] sm:$0xff]  ;;  %v58_v6 = vld [vmem:[#allocation6 + $0x48] sm:$0xff]  ;;  %v57_v7 = vld [vmem:[#allocation6 + $0x40] sm:$0xff] }
   0xe   :  { %v56_v8 = vld [vmem:[#allocation6 + $0x38] sm:$0xff]  ;;  %v55_v9 = vld [vmem:[#allocation6 + $0x30] sm:$0xff]  ;;  %v54_v10 = vld [vmem:[#allocation6 + $0x28] sm:$0xff] }
   0xf   :  { %v53_v11 = vld [vmem:[#allocation6 + $0x20] sm:$0xff]  ;;  %v52_v12 = vld [vmem:[#allocation6 + $0x18] sm:$0xff]  ;;  %v51_v13 = vld [vmem:[#allocation6 + $0x10] sm:$0xff] }
  0x10   :  { %66 = vmatpush.xpose.msra.mxu0 %v63_v1  ;;  %v50_v14 = vld [vmem:[#allocation6 + $0x8] sm:$0xff]  ;;  %v49_v15 = vld [vmem:[#allocation6] sm:$0xff]  ;;  %v48_v16 = vld [vmem:[#allocation3] sm:$0xff] }
  0x14   :  { %67 = vmatpush.xpose.msra.mxu0 %v62_v2 }
  0x18   :  { %68 = vmatpush.xpose.msra.mxu0 %v61_v3 }
  0x1c   :  { %69 = vmatpush.xpose.msra.mxu0 %v60_v4 }
  0x20   :  { %70 = vmatpush.xpose.msra.mxu0 %v59_v5 }
  0x24   :  { %71 = vmatpush.xpose.msra.mxu0 %v58_v6 }
  0x28   :  { %72 = vmatpush.xpose.msra.mxu0 %v57_v7 }
  0x2c   :  { %73 = vmatpush.xpose.msra.mxu0 %v56_v8 }
  0x30   :  { %74 = vmatpush.xpose.msra.mxu0 %v55_v9 }
  0x34   :  { %75 = vmatpush.xpose.msra.mxu0 %v54_v10 }
  0x38   :  { %76 = vmatpush.xpose.msra.mxu0 %v53_v11 }
  0x3c   :  { %77 = vmatpush.xpose.msra.mxu0 %v52_v12 }
  0x40   :  { %78 = vmatpush.xpose.msra.mxu0 %v51_v13 }
  0x44   :  { %79 = vmatpush.xpose.msra.mxu0 %v50_v14 }
  0x48   :  { %80 = vmatpush.xpose.msra.mxu0 %v49_v15 }
  0x4b   :  { %81 = vmatmul.f32.vlgmr.msra.gmra.mxu0 %v48_v16 }
  0xc8   :  { %v82_v17 = vpop.f32.mrf.mxu0 }
  0xc9   :  { %v91_v18 = vrot.slane %v82_v17, 4 }
  0xcb   :  { %v92_v19 = vmax.f32 %v82_v17, %v91_v18 }
  0xcd   :  { %v93_v20 = vrot.slane %v92_v19, 2 }
  0xcf   :  { %v94_v21 = vmax.f32 %v92_v19, %v93_v20 }
  0xd1   :  { %v95_v22 = vrot.slane %v94_v21, 1 }
  0xd3   :  { %v96_v23 = vmax.f32 %v94_v21, %v95_v22 }
  0xd5   :  { %v97_v24 = vsub.f32 %v82_v17, %v96_v23 }
  0xd7   :  { %v98_v25 = vmul.f32 1.442695, %v97_v24 }
  0xd9   :  { %132 = vpow2.f32 %v98_v25 }
  0xdf   :  { %v133_v26 = vpop.eup %132 }
  0xe0   :  { %v100_v27 = vrot.slane %v133_v26, 4 }
  0xe2   :  { %v101_v28 = vadd.f32 %v133_v26, %v100_v27 }
  0xe4   :  { %v102_v29 = vrot.slane %v101_v28, 2 }
  0xe6   :  { %v103_v30 = vadd.f32 %v102_v29, %v101_v28 }
  0xe8   :  { %v104_v31 = vrot.slane %v103_v30, 1 }
  0xea   :  { %v105_v32 = vadd.f32 %v104_v31, %v103_v30 }
  0xec   :  { %134 = vrcp.f32 %v105_v32 }
  0xf2   :  { %v135_v33 = vpop.eup %134 }
  0xf3   :  { %v107_v34 = vmul.f32 %v135_v33, %v133_v26 }
  0xf5   :  { %108 = vst [vmem:[#allocation8] sm:$0xff] %v107_v34 }
  0xf6   :  { %119 = dma.vmem_to_hbm [thread:$0]  %s115_s1, 128, %s117_s23, [#allocation5]  }
  0xf7   :  { %212 = dma.done.wait [#allocation5], 128  }
  0xf8   :  { %213 = vsyncadd [#allocation5], 4294967168 }
  0xf9   :  { %124 = vsyncpa [#allocation4], 1 }
  0xfa   :  { %125 = vsyncpa [#allocation7], 1 }
  0xfb   :  { %126 = vsyncpa [#allocation5], 1 }

</bundles_post_ra>
